<compile_context>
chip_gen: v5e
topology: v5e:2x2
jax: 0.10.0
libtpu: 0.0.40
codegen_flags: <defaults>
</compile_context>

<pallas_src>
import jax
import jax.numpy as jnp
from jax.experimental import pallas as pl
from jax.experimental.pallas import tpu as pltpu

_LANES = 128
_SUBLANES = 8


def _round_up(x, m):
    return ((x + m - 1) // m) * m


def _linear_kernel(wb_ref, x_ref, o_ref):
    """wb_ref: SMEM (3,) = [w00, w01, bias]          (out_features == 1)
       x_ref : VMEM (2, tr, 128) feature-major, batch folded on (sublane, lane)
       o_ref : VMEM (tr, 128)
    """
    # Pure VPU: full (8,128) vregs, no accumulator scratch, no intermediate slices.
    o_ref[...] = x_ref[0] * wb_ref[0] + x_ref[1] * wb_ref[1] + wb_ref[2]


def ensemble_mlp_forward(preds, weight, bias, *, tr_max=2048, min_pallas_batch=4096):
    """preds: (B, 2); weight: (1, 2) torch [out, in] layout; bias: (1,). Returns (B, 1) f32."""
    B, in_f = preds.shape
    out_f = weight.shape[0]
    assert in_f == 2 and out_f == 1, "EnsembleMLP is Linear(2, 1)"

    w = weight.astype(jnp.float32)
    b = bias.astype(jnp.float32)

    # ---- small-B fast path: fused XLA is strictly faster at tiny sizes --------
    if B < min_pallas_batch:
        return preds.astype(jnp.float32) @ w.T + b

    # ---- tile selection ---------------------------------------------------------
    tr_max = max(_SUBLANES, (int(tr_max) // _SUBLANES) * _SUBLANES)
    rows_needed = pl.cdiv(B, _LANES)                 # 128 batch elems per row
    if rows_needed <= _SUBLANES:
        tr = _SUBLANES                               # one minimal (8,128)-aligned tile
    else:
        # target >= 4 grid steps (2-TC sharding on v7x, bounded pad waste),
        # capped at tr_max (keeps double-buffered footprint ~6 MiB at tr=2048).
        tr = min(tr_max, _round_up(pl.cdiv(rows_needed, 4), _SUBLANES))
    rows_padded = _round_up(rows_needed, tr)
    b_pad = rows_padded * _LANES

    # ---- single fused layout op: pad + transpose to feature-major, then free reshape
    x = preds.astype(jnp.float32)
    if b_pad != B:
        x = jnp.pad(x, ((0, b_pad - B), (0, 0)))
    x_t = x.T.reshape(in_f, rows_padded, _LANES)     # (2, rows, 128), batch lane-dense

    # weights + bias as SMEM scalars: [w00, w01, b0]
    wb = jnp.concatenate([w.reshape(-1), b.reshape(-1)])  # (3,) f32

    grid = (rows_padded // tr,)
    out2d = pl.pallas_call(
        _linear_kernel,
        out_shape=jax.ShapeDtypeStruct((rows_padded, _LANES), jnp.float32),
        grid_spec=pltpu.PrefetchScalarGridSpec(
            num_scalar_prefetch=0,
            grid=grid,
            in_specs=[
                pl.BlockSpec(memory_space=pltpu.MemorySpace.SMEM),      # wb scalars
                pl.BlockSpec((in_f, tr, _LANES), lambda i: (0, i, 0)),  # x tiles
            ],
            out_specs=pl.BlockSpec((tr, _LANES), lambda i: (i, 0)),
        ),
        compiler_params=pltpu.CompilerParams(
            dimension_semantics=("parallel",),  # shards grid over v7x's 2 TCs
        ),
        cost_estimate=pl.CostEstimate(
            flops=3 * b_pad,
            transcendentals=0,
            bytes_accessed=(in_f + out_f) * b_pad * 4,
        ),
    )(wb, x_t)

    out = out2d.reshape(b_pad)[:B]                   # contiguous stream; slice only if padded
    return out[:, None]                              # (B, 1) f32


if __name__ == "__main__":
    key = jax.random.PRNGKey(0)
    k_x, k_w, k_b = jax.random.split(key, 3)

    B, IN, OUT = 8, 2, 1

    # Deterministic params (mimics nn.Linear's U(-1/sqrt(in), 1/sqrt(in)))
    bound = 1.0 / jnp.sqrt(jnp.float32(IN))
    weight = jax.random.uniform(k_w, (OUT, IN), jnp.float32, -bound, bound)
    bias = jax.random.uniform(k_b, (OUT,), jnp.float32, -bound, bound)

    preds = jax.random.normal(k_x, (B, IN), jnp.float32)
    ref = preds @ weight.T + bias

    # 1) Force the Pallas path at the shipped tiny size (single grid step).
    out = jax.block_until_ready(ensemble_mlp_forward(preds, weight, bias, min_pallas_batch=0))
    assert out.shape == (B, OUT)
    assert jnp.allclose(out, ref, atol=1e-5), "mismatch vs reference (B=8, pallas)"

    # 2) Default small-B fast path (plain XLA).
    out_fast = jax.block_until_ready(ensemble_mlp_forward(preds, weight, bias))
    assert jnp.allclose(out_fast, ref, atol=1e-5), "mismatch vs reference (B=8, fast path)"

    # 3) Exercise padding + multi-step parallel grid (small tr_max to keep it quick).
    preds2 = jax.random.normal(jax.random.PRNGKey(1), (2560, IN), jnp.float32)
    out2 = jax.block_until_ready(
        ensemble_mlp_forward(preds2, weight, bias, tr_max=8, min_pallas_batch=0))
    ref2 = preds2 @ weight.T + bias
    assert out2.shape == (2560, OUT)
    assert jnp.allclose(out2, ref2, atol=1e-5), "mismatch vs reference (B=2560, tiled)"

    print("KERNEL_OK")
</pallas_src>

<mosaic_0001>
module attributes {stable_mosaic.version = 11 : i64} {
  func.func @_linear_kernel(%arg0: i32, %arg1: memref<3xf32, #tpu.memory_space<smem>>, %arg2: memref<2x8x128xf32, #tpu.memory_space<vmem>>, %arg3: memref<8x128xf32, #tpu.memory_space<vmem>>) attributes {dimension_semantics = [#tpu.dimension_semantics<parallel>], iteration_bounds = array<i64: 1>, scalar_prefetch = 0 : i64, scratch_operands = 0 : i64, tpu.core_type = #tpu.core_type<tc>, window_params = [{transform_indices = @transform_0, window_bounds = array<i64: 3>}, {transform_indices = @transform_1, window_bounds = array<i64: 2, 8, 128>}, {transform_indices = @transform_2, window_bounds = array<i64: 8, 128>}]} {
    %c0 = arith.constant 0 : index
    %c0_0 = arith.constant 0 : index
    %c0_1 = arith.constant 0 : index
    %0 = vector.load %arg2[%c0, %c0_0, %c0_1] : memref<2x8x128xf32, #tpu.memory_space<vmem>>, vector<1x8x128xf32>
    %1 = vector.shape_cast %0 : vector<1x8x128xf32> to vector<8x128xf32>
    %c0_2 = arith.constant 0 : index
    %2 = memref.load %arg1[%c0_2] : memref<3xf32, #tpu.memory_space<smem>>
    %3 = vector.broadcast %2 : f32 to vector<8x128xf32>
    %4 = arith.mulf %1, %3 : vector<8x128xf32>
    %c1 = arith.constant 1 : index
    %c0_3 = arith.constant 0 : index
    %c0_4 = arith.constant 0 : index
    %5 = vector.load %arg2[%c1, %c0_3, %c0_4] : memref<2x8x128xf32, #tpu.memory_space<vmem>>, vector<1x8x128xf32>
    %6 = vector.shape_cast %5 : vector<1x8x128xf32> to vector<8x128xf32>
    %c1_5 = arith.constant 1 : index
    %7 = memref.load %arg1[%c1_5] : memref<3xf32, #tpu.memory_space<smem>>
    %8 = vector.broadcast %7 : f32 to vector<8x128xf32>
    %9 = arith.mulf %6, %8 : vector<8x128xf32>
    %10 = arith.addf %4, %9 : vector<8x128xf32>
    %c2 = arith.constant 2 : index
    %11 = memref.load %arg1[%c2] : memref<3xf32, #tpu.memory_space<smem>>
    %12 = vector.broadcast %11 : f32 to vector<8x128xf32>
    %13 = arith.addf %10, %12 : vector<8x128xf32>
    %c0_6 = arith.constant 0 : index
    %c0_7 = arith.constant 0 : index
    %14 = vector.load %arg3[%c0_6, %c0_7] : memref<8x128xf32, #tpu.memory_space<vmem>>, vector<8x128xf32>
    tpu.vector_store %arg3[%c0_6, %c0_7], %13 {strides = array<i32>} : memref<8x128xf32, #tpu.memory_space<vmem>>, vector<8x128xf32>,
    return
  }
  func.func @transform_0(%arg0: i32) -> i32 {
    %c0_i32 = arith.constant 0 : i32
    %c0_i32_0 = arith.constant 0 : i32
    return %c0_i32 : i32
  }
  func.func @transform_1(%arg0: i32) -> (i32, i32, i32) {
    %c0_i32 = arith.constant 0 : i32
    %c0_i32_0 = arith.constant 0 : i32
    %c0_i32_1 = arith.constant 0 : i32
    return %c0_i32, %arg0, %c0_i32_0 : i32, i32, i32
  }
  func.func @transform_2(%arg0: i32) -> (i32, i32) {
    %c0_i32 = arith.constant 0 : i32
    %c0_i32_0 = arith.constant 0 : i32
    return %arg0, %c0_i32 : i32, i32
  }
}

</mosaic_0001>

<bundles_post_ra>
// kernel: tpu_custom_call.1
= control target key start
LH: loop header
LB: loop body
LE: loop exit
PB: predicated region body
PF: predicated region fallthrough
CT: control target
= control target key end

     0   :  { %7 = vsyncpa [#allocation5], 0  ;;  %s175_s0 = inlined_call_operand.hbm [shape: f32[3], index: 0, kind: input, shape index: {}]   ;;  %s176_s1 = inlined_call_operand.hbm [shape: f32[2,8,128], index: 1, kind: input, shape index: {}]   ;;  %s177_s2 = inlined_call_operand.hbm [shape: f32[8,128], index: 2, kind: output, shape index: {}]  }
   0x1   :  { %8 = vsyncpa [#allocation3], 0 }
   0x2   :  { %9 = vsyncpa [#allocation4], 0  ;;  %s15_s11 = sshll.u32 %s175_s0, 4  ;;  %s23_s14 = sshll.u32 %s176_s1, 4  ;;  %s16_s11 = int_to_ptr.hbm [resolvable:$true] %s15_s11  ;;  %s24_s14 = int_to_ptr.hbm [resolvable:$true] %s23_s14 }
   0x3   :  { %s146_s15 = smov [#allocation2]   ;;  %s147_s16 = smov [#allocation6]  }
   0x4   :  { %18 = dma.hbm_to_smem %s16_s11, 16, %s146_s15, [#allocation5]  }
   0x5   :  { %s25_s17 = sshll.u32 %s147_s16, 4  ;;  %s148_s18 = smov 128   ;;  %s26_s17 = int_to_ptr.vmem [resolvable:$true] %s25_s17 }
   0x6   :  { %s149_s19 = smov 8  }
   0x7   :  { %31 = dma.hbm_to_vmem [thread:$0]  %s24_s14, 256, %s26_s17, [#allocation3], %s148_s18, %s148_s18, %s149_s19  }
   0x8   :  { %140 = dma.done.wait [#allocation5], 16  }
   0x9   :  { %141 = vsyncadd [#allocation5], 4294967280 }
   0xa   :  { %142 = dma.done.wait [#allocation3], 256  }
   0xb   :  { %143 = vsyncadd [#allocation3], 4294967040 }
   0xc   :  { %40 = sfence }
   0xd   :  { %s42_s0 = sld [smem:[#allocation2]]  ;;  %v41_v0 = vld [vmem:[#allocation6] sm:$0xff]  ;;  %v46_v1 = vld [vmem:[#allocation6 + $0x8] sm:$0xff]  ;;  %s150_s1 = smov [#allocation7]  }
   0xe   :  { %s73_s20 = sld [smem:[#allocation2 + $0x1]]  ;;  %s60_s22 = sshll.u32 %s150_s1, 4  ;;  %s61_s22 = int_to_ptr.vmem [resolvable:$true] %s60_s22 }
   0xf   :  { %s74_s21 = sld [smem:[#allocation2 + $0x2]]  ;;  %s62_s25 = sshll.u32 %s177_s2, 4  ;;  %s63_s25 = int_to_ptr.hbm [resolvable:$true] %s62_s25 }
  0x13   :  { %v43_v2 = vstv %s42_s0 }
  0x14   :  { %v44_v3 = vmul.f32 %v43_v2, %v41_v0  ;;  %v48_v4 = vstv %s73_s20 }
  0x15   :  { %v49_v5 = vmul.f32 %v48_v4, %v46_v1  ;;  %v52_v6 = vstv %s74_s21 }
  0x17   :  { %v50_v7 = vadd.f32 %v49_v5, %v44_v3 }
  0x19   :  { %v53_v8 = vadd.f32 %v52_v6, %v50_v7 }
  0x1b   :  { %54 = vst [vmem:[#allocation7] sm:$0xff] %v53_v8 }
  0x1c   :  { %65 = dma.vmem_to_hbm [thread:$0]  %s61_s22, 128, %s63_s25, [#allocation4]  }
  0x1d   :  { %144 = dma.done.wait [#allocation4], 128  }
  0x1e   :  { %145 = vsyncadd [#allocation4], 4294967168 }
  0x1f   :  { %70 = vsyncpa [#allocation3], 1 }
  0x20   :  { %71 = vsyncpa [#allocation4], 1 }
  0x21   :  { %72 = vsyncpa [#allocation5], 1 }

</bundles_post_ra>
